<compile_context>
chip_gen: v7x
topology: tpu7x:2x2x1
jax: 0.10.0
libtpu: 0.0.40
codegen_flags: <defaults>
</compile_context>

<pallas_src>
import functools

import jax
import jax.numpy as jnp
from jax import lax
from jax.experimental import pallas as pl
from jax.experimental.pallas import tpu as pltpu


def _round_up(x, m):
    return (x + m - 1) // m * m


def _domain_classifier_kernel(
    x_ref,      # (B_pad, tk)     bf16
    w1_ref,     # (tk, E_pad)     bf16
    bn_ref,     # (8, E_pad)      f32   rows: 0=b1, 1=gamma, 2=beta
    w2_ref,     # (E_pad, D_pad)  bf16
    b2_ref,     # (1, D_pad)      f32
    o_ref,      # (B_pad, D_pad)  f32
    h_acc,      # VMEM scratch (B_pad, E_pad) f32
    *,
    eps: float,
    ifsoftmax: bool,
    batch: int,     # real (unpadded) batch size
    domains: int,   # real (unpadded) number of domains
):
    k = pl.program_id(0)

    @pl.when(k == 0)
    def _():
        h_acc[...] = jnp.zeros_like(h_acc)

    # ---- fc1: partial product over this K tile (bf16 in, f32 accumulate) ----
    h_acc[...] += jnp.dot(x_ref[...], w1_ref[...],
                          preferred_element_type=jnp.float32)

    @pl.when(k == pl.num_programs(0) - 1)
    def _():
        b1 = bn_ref[0:1, :]
        gamma = bn_ref[1:2, :]
        beta = bn_ref[2:3, :]

        h = h_acc[...] + b1
        bp = h.shape[0]

        # ---- bn1: training-mode batch statistics (biased variance) ----
        # Padded batch rows must not contribute to the statistics.
        row_ids = lax.broadcasted_iota(jnp.int32, (bp, 1), 0)
        row_mask = (row_ids < batch).astype(jnp.float32)
        inv_b = 1.0 / batch
        mean = jnp.sum(h * row_mask, axis=0, keepdims=True) * inv_b
        centered = h - mean
        var = jnp.sum(centered * centered * row_mask, axis=0,
                      keepdims=True) * inv_b

        # Fold gamma into rsqrt once per feature ((1,E) work), then a single
        # FMA + ReLU over the (B,E) tile.
        scale = lax.rsqrt(var + eps) * gamma
        hn = jnp.maximum(centered * scale + beta, 0.0)

        # ---- fc2 (bf16 in, f32 accumulate) ----
        out = jnp.dot(hn.astype(jnp.bfloat16), w2_ref[...],
                      preferred_element_type=jnp.float32) + b2_ref[...]

        # ---- optional softmax over the domain axis ----
        # Padded domain columns are masked out of the denominator.
        if ifsoftmax:
            col_ids = lax.broadcasted_iota(jnp.int32, out.shape, 1)
            out = jnp.where(col_ids < domains, out, -1e30)
            m = jnp.max(out, axis=1, keepdims=True)
            e = jnp.exp(out - m)
            out = e * pl.reciprocal(jnp.sum(e, axis=1, keepdims=True),
                                    approx=True)

        o_ref[...] = out.astype(o_ref.dtype)


def domain_classifier_forward(x, params, *, eps=1e-5, ifsoftmax=False):
    """x: (B, E) float32.  params: dict of fc1/bn1/fc2 parameters (see init_params)."""
    B, E = x.shape
    D = params["w2"].shape[1]

    B_pad = _round_up(B, 8)
    E_pad = _round_up(E, 128)
    D_pad = _round_up(D, 128)
    tk = 128                      # fc1 reduction tile (lane aligned)
    k_tiles = E_pad // tk

    def pad2(a, r, c):
        return jnp.pad(a, ((0, r - a.shape[0]), (0, c - a.shape[1])))

    # bf16 matmul operands (halved DMA, native MXU path); BN affine / biases f32.
    x_p = pad2(x, B_pad, E_pad).astype(jnp.bfloat16)
    w1_p = pad2(params["w1"], E_pad, E_pad).astype(jnp.bfloat16)
    w2_p = pad2(params["w2"], E_pad, D_pad).astype(jnp.bfloat16)
    # Stack b1/gamma/beta into one (8, E_pad) operand: single DMA + buffer.
    bn_p = pad2(
        jnp.concatenate(
            [params["b1"].astype(jnp.float32),
             params["gamma"].astype(jnp.float32),
             params["beta"].astype(jnp.float32)], axis=0),
        8, E_pad)
    b2_p = pad2(params["b2"].astype(jnp.float32), 1, D_pad)

    kernel = functools.partial(
        _domain_classifier_kernel,
        eps=eps, ifsoftmax=ifsoftmax, batch=B, domains=D,
    )

    flops = 2 * B_pad * E_pad * E_pad + 2 * B_pad * E_pad * D_pad
    bytes_accessed = (x_p.size * 2 + w1_p.size * 2 + w2_p.size * 2
                      + (bn_p.size + b2_p.size) * 4
                      + B_pad * D_pad * 4)
    cost = pl.CostEstimate(
        flops=flops,
        transcendentals=B_pad * D_pad if ifsoftmax else 0,
        bytes_accessed=bytes_accessed,
    )

    out_padded = pl.pallas_call(
        kernel,
        out_shape=jax.ShapeDtypeStruct((B_pad, D_pad), jnp.float32),
        grid_spec=pltpu.PrefetchScalarGridSpec(
            num_scalar_prefetch=0,
            grid=(k_tiles,),
            in_specs=[
                pl.BlockSpec((B_pad, tk), lambda k: (0, k)),      # x (K tile)
                pl.BlockSpec((tk, E_pad), lambda k: (k, 0)),      # w1 (K tile)
                pl.BlockSpec((8, E_pad), lambda k: (0, 0)),       # b1/gamma/beta
                pl.BlockSpec((E_pad, D_pad), lambda k: (0, 0)),   # w2
                pl.BlockSpec((1, D_pad), lambda k: (0, 0)),       # b2
            ],
            out_specs=pl.BlockSpec((B_pad, D_pad), lambda k: (0, 0)),
            scratch_shapes=[pltpu.VMEM((B_pad, E_pad), jnp.float32)],
        ),
        compiler_params=pltpu.CompilerParams(
            dimension_semantics=("arbitrary",),       # K is a reduction axis
            vmem_limit_bytes=48 * 1024 * 1024,        # v7x-safe scoped limit
        ),
        cost_estimate=cost,
    )(x_p, w1_p, bn_p, w2_p, b2_p)

    return out_padded[:B, :D]


def init_params(key, embedding_size, domain_size):
    """Deterministic synthetic parameters matching nn.Linear / nn.BatchNorm1d shapes."""
    k1, k2, k3, k4 = jax.random.split(key, 4)
    bound1 = 1.0 / jnp.sqrt(embedding_size)
    # PyTorch stores Linear weight as (out, in); we keep it transposed to (in, out).
    w1 = jax.random.uniform(k1, (embedding_size, embedding_size),
                            jnp.float32, -bound1, bound1)
    b1 = jax.random.uniform(k2, (1, embedding_size), jnp.float32, -bound1, bound1)
    w2 = jax.random.uniform(k3, (embedding_size, domain_size),
                            jnp.float32, -bound1, bound1)
    b2 = jax.random.uniform(k4, (1, domain_size), jnp.float32, -bound1, bound1)
    gamma = jnp.ones((1, embedding_size), jnp.float32)   # bn1.weight init
    beta = jnp.zeros((1, embedding_size), jnp.float32)   # bn1.bias init
    return {"w1": w1, "b1": b1, "gamma": gamma, "beta": beta, "w2": w2, "b2": b2}


def reference_forward(x, params, *, eps=1e-5, ifsoftmax=False,
                      mxu_dtype=jnp.float32):
    """Pure-JAX reference.  mxu_dtype=bfloat16 mirrors the kernel's mixed precision."""
    h = jnp.dot(x.astype(mxu_dtype), params["w1"].astype(mxu_dtype),
                preferred_element_type=jnp.float32) + params["b1"]
    mean = jnp.mean(h, axis=0, keepdims=True)
    var = jnp.mean((h - mean) ** 2, axis=0, keepdims=True)
    h = (h - mean) / jnp.sqrt(var + eps) * params["gamma"] + params["beta"]
    h = jnp.maximum(h, 0.0)
    out = jnp.dot(h.astype(mxu_dtype), params["w2"].astype(mxu_dtype),
                  preferred_element_type=jnp.float32) + params["b2"]
    if ifsoftmax:
        out = jax.nn.softmax(out, axis=1)
    return out


if __name__ == "__main__":
    batch, embedding_size, domain_size = 8, 32, 8

    key = jax.random.PRNGKey(0)
    kx, kp = jax.random.split(key)
    x = jax.random.normal(kx, (batch, embedding_size), jnp.float32)
    params = init_params(kp, embedding_size, domain_size)

    for sm in (False, True):
        out = jax.block_until_ready(
            domain_classifier_forward(x, params, ifsoftmax=sm))
        assert out.shape == (batch, domain_size)

        # Mixed-precision (bf16 MXU) reference: should match tightly.
        ref_mp = reference_forward(x, params, ifsoftmax=sm,
                                   mxu_dtype=jnp.bfloat16)
        assert jnp.allclose(out, ref_mp, atol=5e-3, rtol=5e-3), \
            f"mismatch vs mixed-precision reference (softmax={sm})"

        # Full-f32 reference: loose tolerance covers bf16 matmul rounding.
        ref_f32 = reference_forward(x, params, ifsoftmax=sm,
                                    mxu_dtype=jnp.float32)
        assert jnp.allclose(out, ref_f32, atol=5e-2, rtol=5e-2), \
            f"mismatch vs f32 reference (softmax={sm})"

    print("KERNEL_OK")
</pallas_src>

<mosaic_0001>
module attributes {stable_mosaic.version = 11 : i64} {
  func.func @_domain_classifier_kernel(%arg0: i32, %arg1: memref<8x128xbf16, #tpu.memory_space<vmem>>, %arg2: memref<128x128xbf16, #tpu.memory_space<vmem>>, %arg3: memref<8x128xf32, #tpu.memory_space<vmem>>, %arg4: memref<128x128xbf16, #tpu.memory_space<vmem>>, %arg5: memref<1x128xf32, #tpu.memory_space<vmem>>, %arg6: memref<8x128xf32, #tpu.memory_space<vmem>>, %arg7: memref<8x128xf32, #tpu.memory_space<vmem>>) attributes {dimension_semantics = [#tpu.dimension_semantics<arbitrary>], iteration_bounds = array<i64: 1>, scalar_prefetch = 0 : i64, scratch_operands = 1 : i64, tpu.core_type = #tpu.core_type<tc>, window_params = [{transform_indices = @transform_0, window_bounds = array<i64: 8, 128>}, {transform_indices = @transform_1, window_bounds = array<i64: 128, 128>}, {pipeline_mode = #tpu.pipeline_mode<synchronous>, transform_indices = @transform_2, window_bounds = array<i64: 8, 128>}, {pipeline_mode = #tpu.pipeline_mode<synchronous>, transform_indices = @transform_3, window_bounds = array<i64: 128, 128>}, {pipeline_mode = #tpu.pipeline_mode<synchronous>, transform_indices = @transform_4, window_bounds = array<i64: 1, 128>}, {pipeline_mode = #tpu.pipeline_mode<synchronous>, transform_indices = @transform_5, window_bounds = array<i64: 8, 128>}]} {
    %c0_i32 = arith.constant 0 : i32
    %0 = arith.cmpi eq, %arg0, %c0_i32 : i32
    %1 = arith.extui %0 : i1 to i32
    %c0_i32_0 = arith.constant 0 : i32
    %2 = arith.cmpi ne, %1, %c0_i32_0 : i32
    scf.if %2 {
      %cst_10 = arith.constant 0.000000e+00 : f32
      %12 = vector.broadcast %cst_10 : f32 to vector<8x128xf32>
      %c0_11 = arith.constant 0 : index
      %c0_12 = arith.constant 0 : index
      %13 = vector.load %arg7[%c0_11, %c0_12] : memref<8x128xf32, #tpu.memory_space<vmem>>, vector<8x128xf32>
      tpu.vector_store %arg7[%c0_11, %c0_12], %12 {strides = array<i32>} : memref<8x128xf32, #tpu.memory_space<vmem>>, vector<8x128xf32>,
    } else {
    }
    %c0 = arith.constant 0 : index
    %c0_1 = arith.constant 0 : index
    %3 = vector.load %arg7[%c0, %c0_1] : memref<8x128xf32, #tpu.memory_space<vmem>>, vector<8x128xf32>
    %c0_2 = arith.constant 0 : index
    %c0_3 = arith.constant 0 : index
    %4 = vector.load %arg1[%c0_2, %c0_3] : memref<8x128xbf16, #tpu.memory_space<vmem>>, vector<8x128xbf16>
    %c0_4 = arith.constant 0 : index
    %c0_5 = arith.constant 0 : index
    %5 = vector.load %arg2[%c0_4, %c0_5] : memref<128x128xbf16, #tpu.memory_space<vmem>>, vector<128x128xbf16>
    %cst = arith.constant dense<0.000000e+00> : vector<8x128xf32>
    %6 = tpu.matmul %4, %5, %cst {dimension_numbers = #tpu.dot_dimension_numbers<[1], [0], [0], [1], [0, 0, 1, 1], [], []>} : vector<8x128xbf16>, vector<128x128xbf16>, vector<8x128xf32> -> vector<8x128xf32>
    %7 = arith.addf %3, %6 : vector<8x128xf32>
    %c0_6 = arith.constant 0 : index
    %c0_7 = arith.constant 0 : index
    %8 = vector.load %arg7[%c0_6, %c0_7] : memref<8x128xf32, #tpu.memory_space<vmem>>, vector<8x128xf32>
    tpu.vector_store %arg7[%c0_6, %c0_7], %7 {strides = array<i32>} : memref<8x128xf32, #tpu.memory_space<vmem>>, vector<8x128xf32>,
    %c0_i32_8 = arith.constant 0 : i32
    %9 = arith.cmpi eq, %arg0, %c0_i32_8 : i32
    %10 = arith.extui %9 : i1 to i32
    %c0_i32_9 = arith.constant 0 : i32
    %11 = arith.cmpi ne, %10, %c0_i32_9 : i32
    scf.if %11 {
      %c0_10 = arith.constant 0 : index
      %c0_11 = arith.constant 0 : index
      %12 = vector.load %arg3[%c0_10, %c0_11] : memref<8x128xf32, #tpu.memory_space<vmem>>, vector<1x128xf32>
      %c1 = arith.constant 1 : index
      %c0_12 = arith.constant 0 : index
      %13 = vector.load %arg3[%c1, %c0_12] : memref<8x128xf32, #tpu.memory_space<vmem>>, vector<1x128xf32>
      %c2 = arith.constant 2 : index
      %c0_13 = arith.constant 0 : index
      %14 = vector.load %arg3[%c2, %c0_13] : memref<8x128xf32, #tpu.memory_space<vmem>>, vector<1x128xf32>
      %c0_14 = arith.constant 0 : index
      %c0_15 = arith.constant 0 : index
      %15 = vector.load %arg7[%c0_14, %c0_15] : memref<8x128xf32, #tpu.memory_space<vmem>>, vector<8x128xf32>
      %16 = vector.broadcast %12 : vector<1x128xf32> to vector<8x128xf32>
      %17 = arith.addf %15, %16 : vector<8x128xf32>
      %18 = tpu.iota {dimensions = array<i32: 0>} : vector<8x1xi32>
      %c8_i32 = arith.constant 8 : i32
      %19 = vector.broadcast %c8_i32 : i32 to vector<8x1xi32>
      %20 = arith.cmpi slt, %18, %19 : vector<8x1xi32>
      %21 = arith.extui %20 : vector<8x1xi1> to vector<8x1xi32>
      %22 = arith.sitofp %21 : vector<8x1xi32> to vector<8x1xf32>
      %23 = vector.broadcast %22 : vector<8x1xf32> to vector<8x128xf32>
      %24 = arith.mulf %17, %23 : vector<8x128xf32>
      %cst_16 = arith.constant dense<0.000000e+00> : vector<128xf32>
      %25 = vector.multi_reduction <add>, %24, %cst_16 [0] : vector<8x128xf32> to vector<128xf32>
      %26 = vector.shape_cast %25 : vector<128xf32> to vector<1x128xf32>
      %cst_17 = arith.constant 1.250000e-01 : f32
      %27 = vector.broadcast %cst_17 : f32 to vector<1x128xf32>
      %28 = arith.mulf %26, %27 : vector<1x128xf32>
      %29 = vector.broadcast %28 : vector<1x128xf32> to vector<8x128xf32>
      %30 = arith.subf %17, %29 : vector<8x128xf32>
      %31 = arith.mulf %30, %30 : vector<8x128xf32>
      %32 = vector.broadcast %22 : vector<8x1xf32> to vector<8x128xf32>
      %33 = arith.mulf %31, %32 : vector<8x128xf32>
      %cst_18 = arith.constant dense<0.000000e+00> : vector<128xf32>
      %34 = vector.multi_reduction <add>, %33, %cst_18 [0] : vector<8x128xf32> to vector<128xf32>
      %35 = vector.shape_cast %34 : vector<128xf32> to vector<1x128xf32>
      %cst_19 = arith.constant 1.250000e-01 : f32
      %36 = vector.broadcast %cst_19 : f32 to vector<1x128xf32>
      %37 = arith.mulf %35, %36 : vector<1x128xf32>
      %cst_20 = arith.constant 9.99999974E-6 : f32
      %38 = vector.broadcast %cst_20 : f32 to vector<1x128xf32>
      %39 = arith.addf %37, %38 : vector<1x128xf32>
      %40 = math.rsqrt %39 : vector<1x128xf32>
      %41 = arith.mulf %40, %13 : vector<1x128xf32>
      %42 = vector.broadcast %41 : vector<1x128xf32> to vector<8x128xf32>
      %43 = arith.mulf %30, %42 : vector<8x128xf32>
      %44 = vector.broadcast %14 : vector<1x128xf32> to vector<8x128xf32>
      %45 = arith.addf %43, %44 : vector<8x128xf32>
      %cst_21 = arith.constant 0.000000e+00 : f32
      %46 = vector.broadcast %cst_21 : f32 to vector<8x128xf32>
      %47 = arith.maximumf %45, %46 : vector<8x128xf32>
      %48 = arith.truncf %47 : vector<8x128xf32> to vector<8x128xbf16>
      %c0_22 = arith.constant 0 : index
      %c0_23 = arith.constant 0 : index
      %49 = vector.load %arg4[%c0_22, %c0_23] : memref<128x128xbf16, #tpu.memory_space<vmem>>, vector<128x128xbf16>
      %cst_24 = arith.constant dense<0.000000e+00> : vector<8x128xf32>
      %50 = tpu.matmul %48, %49, %cst_24 {dimension_numbers = #tpu.dot_dimension_numbers<[1], [0], [0], [1], [0, 0, 1, 1], [], []>} : vector<8x128xbf16>, vector<128x128xbf16>, vector<8x128xf32> -> vector<8x128xf32>
      %c0_25 = arith.constant 0 : index
      %c0_26 = arith.constant 0 : index
      %51 = vector.load %arg5[%c0_25, %c0_26] : memref<1x128xf32, #tpu.memory_space<vmem>>, vector<1x128xf32>
      %52 = vector.broadcast %51 : vector<1x128xf32> to vector<8x128xf32>
      %53 = arith.addf %50, %52 : vector<8x128xf32>
      %c0_27 = arith.constant 0 : index
      %c0_28 = arith.constant 0 : index
      %54 = vector.load %arg6[%c0_27, %c0_28] : memref<8x128xf32, #tpu.memory_space<vmem>>, vector<8x128xf32>
      tpu.vector_store %arg6[%c0_27, %c0_28], %53 {strides = array<i32>} : memref<8x128xf32, #tpu.memory_space<vmem>>, vector<8x128xf32>,
    } else {
    }
    return
  }
  func.func @transform_0(%arg0: i32) -> (i32, i32) {
    %c0_i32 = arith.constant 0 : i32
    %c0_i32_0 = arith.constant 0 : i32
    return %c0_i32, %arg0 : i32, i32
  }
  func.func @transform_1(%arg0: i32) -> (i32, i32) {
    %c0_i32 = arith.constant 0 : i32
    %c0_i32_0 = arith.constant 0 : i32
    return %arg0, %c0_i32 : i32, i32
  }
  func.func @transform_2(%arg0: i32) -> (i32, i32) {
    %c0_i32 = arith.constant 0 : i32
    %c0_i32_0 = arith.constant 0 : i32
    %c0_i32_1 = arith.constant 0 : i32
    return %c0_i32, %c0_i32_0 : i32, i32
  }
  func.func @transform_3(%arg0: i32) -> (i32, i32) {
    %c0_i32 = arith.constant 0 : i32
    %c0_i32_0 = arith.constant 0 : i32
    %c0_i32_1 = arith.constant 0 : i32
    return %c0_i32, %c0_i32_0 : i32, i32
  }
  func.func @transform_4(%arg0: i32) -> (i32, i32) {
    %c0_i32 = arith.constant 0 : i32
    %c0_i32_0 = arith.constant 0 : i32
    %c0_i32_1 = arith.constant 0 : i32
    return %c0_i32, %c0_i32_0 : i32, i32
  }
  func.func @transform_5(%arg0: i32) -> (i32, i32) {
    %c0_i32 = arith.constant 0 : i32
    %c0_i32_0 = arith.constant 0 : i32
    %c0_i32_1 = arith.constant 0 : i32
    return %c0_i32, %c0_i32_0 : i32, i32
  }
}

</mosaic_0001>

<bundles_post_ra>
// kernel: tpu_custom_call.1
= control target key start
LH: loop header
LB: loop body
LE: loop exit
PB: predicated region body
PF: predicated region fallthrough
CT: control target
= control target key end

     0   :  { %10 = vsyncpa [#allocation4], 0  ;;  %s695_s0 = inlined_call_operand.hbm [shape: bf16[8,128], index: 0, kind: input, shape index: {}]   ;;  %s696_s1 = inlined_call_operand.hbm [shape: bf16[128,128], index: 1, kind: input, shape index: {}]   ;;  %s697_s2 = inlined_call_operand.hbm [shape: f32[8,128], index: 2, kind: input, shape index: {}]   ;;  %s698_s3 = inlined_call_operand.hbm [shape: bf16[128,128], index: 3, kind: input, shape index: {}]   ;;  %s699_s4 = inlined_call_operand.vmem [shape: f32[1,128], index: 4, kind: input, shape index: {}]   ;;  %s700_s5 = inlined_call_operand.hbm [shape: f32[8,128], index: 5, kind: output, shape index: {}]  }
   0x1   :  { %11 = vsyncpa [#allocation7], 0 }
   0x2   :  { %12 = vsyncpa [#allocation10], 0 }
   0x3   :  { %13 = vsyncpa [#allocation5], 0  ;;  %s587_s18 = smov [#allocation6]   ;;  %s469_s22 = scalar_lea.hbm %s696_s1, 1024 }
   0x4   :  { %s29_s19 = sshll.u32 %s587_s18, 4  ;;  %p470_p0 = scmp.ne.s32.totalorder %s696_s1, %s469_s22  ;;  %s30_s19 = int_to_ptr.vmem [resolvable:$true] %s29_s19 }
   0x5   :  { %p473_p1 = scmp.lt.u32.totalorder %s469_s22, %s696_s1 }
   0x7   :  { %p475_p2 = pnand %p473_p1, %p470_p0 }
   0x9   :  { %478 = shalt.err (!%p475_p2)
}
   0xa   :  { %s479_s27 = scalar_lea.vmem %s30_s19, 1024  ;;  %p484_p4 = scmp.lt.s32.totalorder %s30_s19, %s30_s19 }
   0xb   :  { %p480_p3 = scmp.ne.s32.totalorder %s30_s19, %s479_s27  ;;  %p485_p5 = scmp.lt.s32.totalorder %s479_s27, %s479_s27 }
   0xd   :  { %p486_p6 = por %p485_p5, %p484_p4 }
   0xf   :  { %p487_p7 = pnand %p486_p6, %p480_p3 }
  0x11   :  { %490 = shalt.err (!%p487_p7)
}
  0x12   :  { %s588_s28 = smov 64   ;;  %s589_s29 = smov 4  }
  0x13   :  { %35 = dma.hbm_to_vmem [thread:$0]  %s696_s1, 1024, %s30_s19, [#allocation7], %s588_s28, %s588_s28, %s589_s29  }
  0x14   :  { %s590_s7 = smov [#allocation3]   ;;  %s591_s9 = smov [#allocation8]  }
  0x15   :  { %s20_s8 = sshll.u32 %s590_s7, 4  ;;  %s42_s10 = sshll.u32 %s591_s9, 4  ;;  %s21_s8 = int_to_ptr.vmem [resolvable:$true] %s20_s8  ;;  %s43_s10 = int_to_ptr.vmem [resolvable:$true] %s42_s10 }
  0x16   :  { %s491_s13 = scalar_lea.hbm %s695_s0, 64 }
  0x17   :  { %p492_p8 = scmp.ne.s32.totalorder %s695_s0, %s491_s13  ;;  %p495_p9 = scmp.lt.u32.totalorder %s491_s13, %s695_s0 }
  0x19   :  { %p497_p10 = pnand %p495_p9, %p492_p8 }
  0x1b   :  { %500 = shalt.err (!%p497_p10)
}
  0x1c   :  { %s501_s1 = scalar_lea.vmem %s21_s8, 64  ;;  %p506_p12 = scmp.lt.s32.totalorder %s21_s8, %s21_s8 }
  0x1d   :  { %p502_p11 = scmp.ne.s32.totalorder %s21_s8, %s501_s1  ;;  %p507_p13 = scmp.lt.s32.totalorder %s501_s1, %s501_s1 }
  0x1f   :  { %p508_p0 = por %p507_p13, %p506_p12 }
  0x21   :  { %p509_p1 = pnand %p508_p0, %p502_p11 }
  0x23   :  { %512 = shalt.err (!%p509_p1)
}
  0x24   :  { %23 = dma.hbm_to_vmem [thread:$0]  %s695_s0, 64, %s21_s8, [#allocation4]  }
  0x25   :  { %s513_s22 = scalar_lea.hbm %s697_s2, 128 }
  0x26   :  { %p514_p2 = scmp.ne.s32.totalorder %s697_s2, %s513_s22  ;;  %p517_p3 = scmp.lt.u32.totalorder %s513_s22, %s697_s2 }
  0x28   :  { %p519_p4 = pnand %p517_p3, %p514_p2 }
  0x2a   :  { %522 = shalt.err (!%p519_p4)
}
  0x2b   :  { %s523_s27 = scalar_lea.vmem %s43_s10, 128  ;;  %p528_p6 = scmp.lt.s32.totalorder %s43_s10, %s43_s10 }
  0x2c   :  { %p524_p5 = scmp.ne.s32.totalorder %s43_s10, %s523_s27  ;;  %p529_p7 = scmp.lt.s32.totalorder %s523_s27, %s523_s27 }
  0x2e   :  { %p530_p8 = por %p529_p7, %p528_p6 }
  0x30   :  { %p531_p9 = pnand %p530_p8, %p524_p5 }
  0x32   :  { %534 = shalt.err (!%p531_p9)
}
  0x33   :  { %45 = dma.hbm_to_vmem [thread:$0]  %s697_s2, 128, %s43_s10, [#allocation7]  }
  0x34   :  { %s592_s6 = smov [#allocation9]   ;;  %s535_s11 = scalar_lea.hbm %s698_s3, 1024 }
  0x35   :  { %s51_s7 = sshll.u32 %s592_s6, 4  ;;  %p536_p10 = scmp.ne.s32.totalorder %s698_s3, %s535_s11  ;;  %s52_s7 = int_to_ptr.vmem [resolvable:$true] %s51_s7 }
  0x36   :  { %p539_p11 = scmp.lt.u32.totalorder %s535_s11, %s698_s3 }
  0x38   :  { %p541_p12 = pnand %p539_p11, %p536_p10 }
  0x3a   :  { %544 = shalt.err (!%p541_p12)
}
  0x3b   :  { %s545_s16 = scalar_lea.vmem %s52_s7, 1024  ;;  %p550_p0 = scmp.lt.s32.totalorder %s52_s7, %s52_s7 }
  0x3c   :  { %p546_p13 = scmp.ne.s32.totalorder %s52_s7, %s545_s16  ;;  %p551_p1 = scmp.lt.s32.totalorder %s545_s16, %s545_s16 }
  0x3e   :  { %p552_p2 = por %p551_p1, %p550_p0 }
  0x40   :  { %p553_p3 = pnand %p552_p2, %p546_p13 }
  0x42   :  { %556 = shalt.err (!%p553_p3)
}
  0x43   :  { %57 = dma.hbm_to_vmem [thread:$0]  %s698_s3, 1024, %s52_s7, [#allocation10], %s588_s28, %s588_s28, %s589_s29  }
  0x44   :  { %579 = dma.done.wait [#allocation4], 64  }
  0x45   :  { %580 = vsyncadd [#allocation4], 4294967232 }
  0x46   :  { %581 = dma.done.wait [#allocation7], 1152  }
  0x47   :  { %582 = vsyncadd [#allocation7], 4294966144 }
  0x48   :  { %583 = dma.done.wait [#allocation10], 1024  }
  0x49   :  { %584 = vsyncadd [#allocation10], 4294966272  ;;  %v593_v0 = vmov 0.0   ;;  %vm594_vm0 = vmmov 0   ;;  %v451_v1 = vld [vmem:[#allocation6] sm:$0xff]   ;;  %v452_v2 = vld [vmem:[#allocation6 + $0x8] sm:$0xff]   ;;  %v224_v41 = vlaneseq }
  0x4a   :  { %402 = vmatprep.subr.bf16.mxu0 %v593_v0  ;;  %418 = vmatprep.mubr.msk.bf16.mxu0 %vm594_vm0, %v593_v0  ;;  %v453_v3 = vld [vmem:[#allocation6 + $0x10] sm:$0xff]   ;;  %v454_v4 = vld [vmem:[#allocation6 + $0x18] sm:$0xff]   ;;  %v455_v5 = vld [vmem:[#allocation6 + $0x20] sm:$0xff]   ;;  %s595_s29 = smov [#allocation11]  }
  0x4b   :  { %422 = vmatprep.subr.bf16.mxu1 %v593_v0  ;;  %438 = vmatprep.mubr.msk.bf16.mxu1 %vm594_vm0, %v593_v0  ;;  %v456_v6 = vld [vmem:[#allocation6 + $0x28] sm:$0xff]   ;;  %v457_v7 = vld [vmem:[#allocation6 + $0x30] sm:$0xff]   ;;  %v458_v8 = vld [vmem:[#allocation6 + $0x38] sm:$0xff]   ;;  %v225_v42 = vshrl.u32 %v224_v41, 7  ;;  %s354_s17 = sshll.u32 %s595_s29, 4  ;;  %s355_s17 = int_to_ptr.vmem [resolvable:$true] %s354_s17 }
  0x4c   :  { %403 = vmatpush3.bf16.msra.mxu0 %v451_v1  ;;  %v79_v9 = vld [vmem:[#allocation3] sm:$0xf]  ;;  %v459_v10 = vld [vmem:[#allocation9] sm:$0xff]   ;;  %v460_v11 = vld [vmem:[#allocation9 + $0x8] sm:$0xff]   ;;  %s557_s1 = scalar_lea.vmem %s355_s17, 128  ;;  %p562_p5 = scmp.lt.s32.totalorder %s355_s17, %s355_s17 }
  0x4d   :  { %404 = vmatprep.subr.bf16.mxu0 %v593_v0  ;;  %423 = vmatpush3.bf16.msra.mxu1 %v459_v10  ;;  %v461_v12 = vld [vmem:[#allocation9 + $0x10] sm:$0xff]   ;;  %v462_v13 = vld [vmem:[#allocation9 + $0x18] sm:$0xff]   ;;  %v463_v14 = vld [vmem:[#allocation9 + $0x20] sm:$0xff]   ;;  %v226_v44 = vsub.s32 0, %v225_v42  ;;  %p558_p4 = scmp.ne.s32.totalorder %s355_s17, %s557_s1  ;;  %p563_p6 = scmp.lt.s32.totalorder %s557_s1, %s557_s1 }
  0x4e   :  { %424 = vmatprep.subr.bf16.mxu1 %v593_v0  ;;  %v464_v15 = vld [vmem:[#allocation9 + $0x28] sm:$0xff]   ;;  %v465_v16 = vld [vmem:[#allocation9 + $0x30] sm:$0xff]   ;;  %v466_v17 = vld [vmem:[#allocation9 + $0x38] sm:$0xff]  }
  0x4f   :  { %v373_v18 = vld [vmem:[#allocation8] ss:$0 sm:$0xff]  ;;  %v190_v43 = vld [vmem:[#allocation8 + $0x1] sm:$0x1]  ;;  %v374_v48 = vld [vmem:[#allocation8 + $0x2] ss:$0 sm:$0xff]  ;;  %p564_p7 = por %p563_p6, %p562_p5 }
  0x50   :  { %405 = vmatpush3.bf16.msra.mxu0 %v452_v2  ;;  %v375_v53 = vld [vmem:[%s699_s4] ss:$0 sm:$0xff] }
  0x51   :  { %406 = vmatprep.subr.bf16.mxu0 %v593_v0  ;;  %425 = vmatpush3.bf16.msra.mxu1 %v460_v11  ;;  %p565_p8 = pnand %p564_p7, %p558_p4 }
  0x52   :  { %426 = vmatprep.subr.bf16.mxu1 %v593_v0 }
  0x54   :  { %407 = vmatpush3.bf16.msra.mxu0 %v453_v3 }
  0x55   :  { %408 = vmatprep.subr.bf16.mxu0 %v593_v0  ;;  %427 = vmatpush3.bf16.msra.mxu1 %v461_v12 }
  0x56   :  { %428 = vmatprep.subr.bf16.mxu1 %v593_v0 }
  0x58   :  { %409 = vmatpush3.bf16.msra.mxu0 %v454_v4 }
  0x59   :  { %410 = vmatprep.subr.bf16.mxu0 %v593_v0  ;;  %429 = vmatpush3.bf16.msra.mxu1 %v462_v13 }
  0x5a   :  { %430 = vmatprep.subr.bf16.mxu1 %v593_v0 }
  0x5c   :  { %411 = vmatpush3.bf16.msra.mxu0 %v455_v5 }
  0x5d   :  { %412 = vmatprep.subr.bf16.mxu0 %v593_v0  ;;  %431 = vmatpush3.bf16.msra.mxu1 %v463_v14 }
  0x5e   :  { %432 = vmatprep.subr.bf16.mxu1 %v593_v0 }
  0x60   :  { %413 = vmatpush3.bf16.msra.mxu0 %v456_v6 }
  0x61   :  { %414 = vmatprep.subr.bf16.mxu0 %v593_v0  ;;  %433 = vmatpush3.bf16.msra.mxu1 %v464_v15 }
  0x62   :  { %434 = vmatprep.subr.bf16.mxu1 %v593_v0 }
  0x64   :  { %415 = vmatpush3.bf16.msra.mxu0 %v457_v7 }
  0x65   :  { %416 = vmatprep.subr.bf16.mxu0 %v593_v0  ;;  %435 = vmatpush3.bf16.msra.mxu1 %v465_v16 }
  0x66   :  { %436 = vmatprep.subr.bf16.mxu1 %v593_v0 }
  0x68   :  { %417 = vmatpush3.bf16.msra.mxu0 %v458_v8 }
  0x69   :  { %437 = vmatpush3.bf16.msra.mxu1 %v466_v17 }
  0x6b   :  { %419 = vmatmul.mubr.bf16.vlgmr.msra.gmra.mrb[0].mxu0 %v79_v9 }
 0x13e   :  { %v178_v19 = vpop.f32.mrb[0].mxu0 }
 0x13f   :  { %v197_v20 = vadd.f32 %v373_v18, %v178_v19  ;;  %v420_v21 = vpop.f32.mrb[1].mxu0 }
 0x140   :  { %v181_v22 = vpop.f32.mrb[2].mxu0 }
 0x141   :  { %v204_v23 = vrot.slane %v197_v20, 4  ;;  %v421_v24 = vpop.f32.mrb[3].mxu0 }
 0x143   :  { %v205_v25 = vadd.f32 %v204_v23, %v197_v20 }
 0x145   :  { %v206_v26 = vrot.slane %v205_v25, 2 }
 0x147   :  { %v207_v27 = vadd.f32 %v206_v26, %v205_v25 }
 0x149   :  { %v208_v28 = vrot.slane %v207_v27, 1 }
 0x14b   :  { %v209_v29 = vadd.f32 %v208_v28, %v207_v27 }
 0x14d   :  { %v210_v30 = vmul.f32 0.125, %v209_v29 }
 0x14f   :  { %v211_v31 = vsub.f32 %v197_v20, %v210_v30 }
 0x151   :  { %v212_v32 = vmul.f32 %v211_v31, %v211_v31 }
 0x153   :  { %v214_v33 = vrot.slane %v212_v32, 4 }
 0x155   :  { %v215_v34 = vadd.f32 %v214_v33, %v212_v32 }
 0x157   :  { %v216_v35 = vrot.slane %v215_v34, 2 }
 0x159   :  { %v217_v36 = vadd.f32 %v216_v35, %v215_v34 }
 0x15b   :  { %v218_v37 = vrot.slane %v217_v36, 1 }
 0x15d   :  { %v219_v38 = vadd.f32 %v218_v37, %v217_v36 }
 0x15f   :  { %v220_v39 = vmul.f32 0.125, %v219_v38 }
 0x161   :  { %v221_v40 = vadd.f32 1e-05, %v220_v39 }
 0x163   :  { %467 = vrsqrt.f32 %v221_v40 }
 0x16d   :  { %v468_v45 = vpop.eup %467 }
 0x16e   :  { %v223_v46 = vmul.f32 %v468_v45, %v190_v43 }
 0x170   :  { %v227_v47 = vrot.slane %v223_v46, %v226_v44 }
 0x172   :  { %v228_v49 = vmul.f32 %v227_v47, %v211_v31 }
 0x174   :  { %v233_v50 = vadd.f32 %v374_v48, %v228_v49 }
 0x176   :  { %v234_v51 = vmax.f32 %v233_v50, 0.0 }
 0x178   :  { %v235_v52 = vpack.c.bf16 %v234_v51, %v234_v51 }
 0x17a   :  { %439 = vmatmul.mubr.bf16.vlgmr.msra.gmra.mrb[0].mxu1 %v235_v52 }
 0x24d   :  { %v341_v54 = vpop.f32.mrb[0].mxu1 }
 0x24e   :  { %v342_v55 = vadd.f32 %v375_v53, %v341_v54  ;;  %v440_v56 = vpop.f32.mrb[1].mxu1 }
 0x24f   :  { %v344_v57 = vpop.f32.mrb[2].mxu1 }
 0x250   :  { %347 = vst [vmem:[#allocation11] sm:$0xff] %v342_v55  ;;  %v441_v58 = vpop.f32.mrb[3].mxu1 }
 0x251   :  { %568 = shalt.err (!%p565_p8)
}
 0x252   :  { %s569_s4 = scalar_lea.hbm %s700_s5, 128 }
 0x253   :  { %p570_p9 = scmp.ne.s32.totalorder %s700_s5, %s569_s4  ;;  %p573_p10 = scmp.lt.u32.totalorder %s569_s4, %s700_s5 }
 0x255   :  { %p575_p11 = pnand %p573_p10, %p570_p9 }
 0x257   :  { %578 = shalt.err (!%p575_p11)
}
 0x258   :  { %357 = dma.vmem_to_hbm [thread:$0]  %s355_s17, 128, %s700_s5, [#allocation5]  }
 0x259   :  { %585 = dma.done.wait [#allocation5], 128  }
 0x25a   :  { %586 = vsyncadd [#allocation5], 4294967168 }
 0x25b   :  { %361 = vsyncpa [#allocation4], 1 }
 0x25c   :  { %362 = vsyncpa [#allocation7], 1 }
 0x25d   :  { %363 = vsyncpa [#allocation10], 1 }
 0x25e   :  { %364 = vsyncpa [#allocation5], 1 }

</bundles_post_ra>
